<compile_context>
chip_gen: v7x
topology: tpu7x:2x2x1
jax: 0.10.0
libtpu: 0.0.40
codegen_flags: <defaults>
</compile_context>

<pallas_src>
import jax
import jax.numpy as jnp
from jax.experimental import pallas as pl
from jax.experimental.pallas import tpu as pltpu

LANE = 128
SUBLANE_BF16 = 16   # native bf16 sublane tile is (16, 128)
NEG_SLOPE = 0.2


def _round_up(n, m):
    return ((n + m - 1) // m) * m


def _usable_vmem_bytes():
    """Per-generation VMEM budget with ~25% headroom for Mosaic scratch/semaphores.
    v5e/v6e: ~96 MiB of 128 MiB; v7x: ~48 MiB of 64 MiB."""
    try:
        cap = pltpu.get_tpu_info().vmem_capacity_bytes
    except Exception:
        cap = 64 * 1024 * 1024
    return int(cap) * 3 // 4


# ----------------------------------------------------------------------------- kernel
def discriminator_kernel(x_ref, w1_ref, b1_ref, w2_ref, b2_ref, w3_ref, b3_ref, o_ref):
    # x_ref: (tb, Din_pad) tile of the batch (f32 or bf16); weights bf16, biases f32.
    # In-kernel cast to bf16 is free (VPU slack) and avoids a wrapper HBM pass
    # when the input arrives as f32.
    x = x_ref[...].astype(jnp.bfloat16)

    # Layer 1: Linear + LeakyReLU(0.2)   (bf16 operands, f32 accumulate)
    h1 = jnp.dot(x, w1_ref[...], preferred_element_type=jnp.float32) + b1_ref[...]
    h1 = jnp.maximum(h1, NEG_SLOPE * h1).astype(jnp.bfloat16)

    # Layer 2: Linear + LeakyReLU(0.2)
    h2 = jnp.dot(h1, w2_ref[...], preferred_element_type=jnp.float32) + b2_ref[...]
    h2 = jnp.maximum(h2, NEG_SLOPE * h2).astype(jnp.bfloat16)

    # Layer 3: Linear (output padded to 128 lanes) + Sigmoid; store bf16 to halve
    # the output write traffic (only column 0 is meaningful, sliced off outside).
    logits = jnp.dot(h2, w3_ref[...], preferred_element_type=jnp.float32) + b3_ref[...]
    o_ref[...] = jax.nn.sigmoid(logits).astype(o_ref.dtype)


# ----------------------------------------------------------------------------- params
def init_discriminator_params(key, data_dim, hidden_dim):
    """PyTorch nn.Linear default init: U(-1/sqrt(fan_in), 1/sqrt(fan_in)).
    Weights stored as (in_features, out_features) so the kernel computes x @ W + b."""
    ks = jax.random.split(key, 6)

    def linear(kw, kb, fan_in, fan_out):
        bound = 1.0 / jnp.sqrt(fan_in)
        w = jax.random.uniform(kw, (fan_in, fan_out), jnp.float32, -bound, bound)
        b = jax.random.uniform(kb, (fan_out,), jnp.float32, -bound, bound)
        return w, b

    w1, b1 = linear(ks[0], ks[1], data_dim, hidden_dim)
    w2, b2 = linear(ks[2], ks[3], hidden_dim, hidden_dim)
    w3, b3 = linear(ks[4], ks[5], hidden_dim, 1)
    return (w1, b1, w2, b2, w3, b3)


def prepare_discriminator_params(params):
    """Zero-pad every feature dim up to a multiple of 128 (lane-dense), cast
    weights to bf16 (MXU operands) and keep biases in f32 (added post-matmul).
    Zero padding is exact: LeakyReLU(0) == 0 and padded bias entries are 0."""
    w1, b1, w2, b2, w3, b3 = params
    din_p = _round_up(w1.shape[0], LANE)
    h_p = _round_up(w1.shape[1], LANE)
    out_p = _round_up(w3.shape[1], LANE)  # final layer: 1 -> 128

    def pad_w(w, rp, cp):
        r, c = w.shape
        return jnp.pad(w, ((0, rp - r), (0, cp - c))).astype(jnp.bfloat16)

    def pad_b(b, cp):
        c = b.shape[-1]
        return jnp.pad(b.reshape(1, -1), ((0, 0), (0, cp - c))).astype(jnp.float32)

    return (pad_w(w1, din_p, h_p), pad_b(b1, h_p),
            pad_w(w2, h_p, h_p), pad_b(b2, h_p),
            pad_w(w3, h_p, out_p), pad_b(b3, out_p))


# ----------------------------------------------------------------------------- forward
def discriminator_forward(x, padded_params, *, batch_tile=None):
    """x: (B, data_dim) float32. Returns (B, 1) float32 = sigmoid(MLP(x))."""
    w1, b1, w2, b2, w3, b3 = padded_params
    B, data_dim = x.shape
    din_p, h_p = w1.shape
    out_p = w3.shape[1]

    needs_lane_pad = (data_dim % LANE) != 0
    in_bytes = 2 if needs_lane_pad else 4  # bf16 (wrapper-padded) vs raw f32 input

    # Footprint model: x + out tiles double-buffered, params single-buffered,
    # f32 intermediates for h1/h2.
    param_bytes = ((din_p * h_p + h_p * h_p + h_p * out_p) * 2
                   + (2 * h_p + out_p) * 4)

    def tile_bytes(t):
        return (2 * t * din_p * in_bytes      # x tiles (2 buffers)
                + 2 * t * out_p * 2           # output tiles (bf16, 2 buffers)
                + 2 * t * h_p * 4)            # h1/h2 f32 intermediates

    usable = _usable_vmem_bytes()

    # Batch tile: multiple of 16 (native bf16 sublane tile). Small batches run in
    # a single grid step; large batches default to tb=512 so grid >= 2 ("parallel"
    # axis shards across both TensorCores on v7x).
    if batch_tile is None:
        tb = _round_up(B, SUBLANE_BF16) if B <= 512 else 512
    else:
        tb = _round_up(batch_tile, SUBLANE_BF16)
    while tb > SUBLANE_BF16 and param_bytes + tile_bytes(tb) + (4 << 20) > usable:
        tb = max(SUBLANE_BF16, _round_up(tb // 2, SUBLANE_BF16))

    B_pad = _round_up(B, tb)
    grid = (B_pad // tb,)

    # Input: only pad/cast in the wrapper when a lane pad is genuinely required;
    # otherwise hand the kernel raw f32 and cast in-kernel (saves an HBM pass).
    if needs_lane_pad:
        x_in = jnp.pad(x, ((0, B_pad - B), (0, din_p - data_dim))).astype(jnp.bfloat16)
    else:
        x_in = jnp.pad(x, ((0, B_pad - B), (0, 0)))

    vmem_limit = min(usable, max(16 << 20, param_bytes + tile_bytes(tb) + (8 << 20)))

    flops = 2 * B_pad * (din_p * h_p + h_p * h_p + h_p * out_p)
    bytes_accessed = (B_pad * din_p * in_bytes          # x read
                      + param_bytes                     # params read once
                      + B_pad * out_p * 2)              # bf16 output write
    cost = pl.CostEstimate(flops=flops,
                           transcendentals=B_pad * out_p,   # sigmoid exps
                           bytes_accessed=bytes_accessed)

    def param_spec(shape):
        nd = len(shape)
        # Grid-invariant parameter block: single-buffered to halve its VMEM cost.
        return pl.BlockSpec(shape, lambda i: (0,) * nd, pipeline_mode=pl.Buffered(1))

    out = pl.pallas_call(
        discriminator_kernel,
        out_shape=jax.ShapeDtypeStruct((B_pad, out_p), jnp.bfloat16),
        grid_spec=pltpu.PrefetchScalarGridSpec(
            num_scalar_prefetch=0,
            grid=grid,
            in_specs=[
                pl.BlockSpec((tb, din_p), lambda i: (i, 0)),   # x batch tile
                param_spec(w1.shape), param_spec(b1.shape),
                param_spec(w2.shape), param_spec(b2.shape),
                param_spec(w3.shape), param_spec(b3.shape),
            ],
            out_specs=pl.BlockSpec((tb, out_p), lambda i: (i, 0)),
        ),
        compiler_params=pltpu.CompilerParams(
            dimension_semantics=("parallel",),   # batch axis -> megacore on v7x
            vmem_limit_bytes=int(vmem_limit),
        ),
        cost_estimate=cost,
    )(x_in, w1, b1, w2, b2, w3, b3)

    # Drop padded rows and padded output lanes (true output width is 1).
    return out[:B, :1].astype(jnp.float32)


# ----------------------------------------------------------------------------- refs
def discriminator_reference_bf16(x, padded_params):
    """Pure-JAX reference mirroring the kernel's bf16-operand / f32-accum numerics."""
    w1, b1, w2, b2, w3, b3 = padded_params
    din_p = w1.shape[0]
    xp = jnp.pad(x, ((0, 0), (0, din_p - x.shape[1]))).astype(jnp.bfloat16)
    h1 = jnp.dot(xp.astype(jnp.float32), w1.astype(jnp.float32)) + b1
    h1 = jnp.maximum(h1, NEG_SLOPE * h1).astype(jnp.bfloat16)
    h2 = jnp.dot(h1.astype(jnp.float32), w2.astype(jnp.float32)) + b2
    h2 = jnp.maximum(h2, NEG_SLOPE * h2).astype(jnp.bfloat16)
    logits = jnp.dot(h2.astype(jnp.float32), w3.astype(jnp.float32)) + b3
    return jax.nn.sigmoid(logits)[:, :1]


def discriminator_reference_f32(x, params):
    """Full-f32 reference with the exact PyTorch module semantics."""
    w1, b1, w2, b2, w3, b3 = params
    h1 = x @ w1 + b1
    h1 = jnp.where(h1 > 0, h1, NEG_SLOPE * h1)
    h2 = h1 @ w2 + b2
    h2 = jnp.where(h2 > 0, h2, NEG_SLOPE * h2)
    return jax.nn.sigmoid(h2 @ w3 + b3)


# ----------------------------------------------------------------------------- main
if __name__ == "__main__":
    key = jax.random.PRNGKey(0)
    k_param, k_x = jax.random.split(key)

    # --- Config 1: small shapes matching the module spec (single grid step). ---
    batch, data_dim, hidden_dim = 32, 16, 32
    params = init_discriminator_params(k_param, data_dim, hidden_dim)
    pparams = prepare_discriminator_params(params)
    x = jax.random.normal(k_x, (batch, data_dim), dtype=jnp.float32)

    out = jax.block_until_ready(discriminator_forward(x, pparams))
    assert out.shape == (batch, 1)

    ref_bf16 = discriminator_reference_bf16(x, pparams)
    assert jnp.allclose(out, ref_bf16, atol=1e-2, rtol=1e-2)

    # Loose check against the exact f32 PyTorch-semantics reference
    # (difference comes only from bf16 weight/activation/output quantization).
    ref_f32 = discriminator_reference_f32(x, params)
    assert jnp.allclose(out, ref_f32, atol=5e-2, rtol=5e-2)

    # --- Config 2: 128-aligned data_dim (raw f32 input, in-kernel bf16 cast) and
    # a 2-step parallel grid (exercises pipelining / dual-TC sharding on v7x). ---
    k2p, k2x = jax.random.split(jax.random.PRNGKey(1))
    batch2, data_dim2, hidden_dim2 = 512, 128, 256
    params2 = init_discriminator_params(k2p, data_dim2, hidden_dim2)
    pparams2 = prepare_discriminator_params(params2)
    x2 = jax.random.normal(k2x, (batch2, data_dim2), dtype=jnp.float32)

    out2 = jax.block_until_ready(discriminator_forward(x2, pparams2, batch_tile=256))
    assert out2.shape == (batch2, 1)
    ref2_f32 = discriminator_reference_f32(x2, params2)
    assert jnp.allclose(out2, ref2_f32, atol=5e-2, rtol=5e-2)

    print("KERNEL_OK")
</pallas_src>

<mosaic_0001>
module attributes {stable_mosaic.version = 11 : i64} {
  func.func @discriminator_kernel(%arg0: i32, %arg1: memref<32x128xbf16, #tpu.memory_space<vmem>>, %arg2: memref<128x128xbf16, #tpu.memory_space<vmem>>, %arg3: memref<1x128xf32, #tpu.memory_space<vmem>>, %arg4: memref<128x128xbf16, #tpu.memory_space<vmem>>, %arg5: memref<1x128xf32, #tpu.memory_space<vmem>>, %arg6: memref<128x128xbf16, #tpu.memory_space<vmem>>, %arg7: memref<1x128xf32, #tpu.memory_space<vmem>>, %arg8: memref<32x128xbf16, #tpu.memory_space<vmem>>) attributes {dimension_semantics = [#tpu.dimension_semantics<parallel>], iteration_bounds = array<i64: 1>, scalar_prefetch = 0 : i64, scratch_operands = 0 : i64, tpu.core_type = #tpu.core_type<tc>, window_params = [{transform_indices = @transform_0, window_bounds = array<i64: 32, 128>}, {pipeline_mode = #tpu.pipeline_mode<synchronous>, transform_indices = @transform_1, window_bounds = array<i64: 128, 128>}, {pipeline_mode = #tpu.pipeline_mode<synchronous>, transform_indices = @transform_2, window_bounds = array<i64: 1, 128>}, {pipeline_mode = #tpu.pipeline_mode<synchronous>, transform_indices = @transform_3, window_bounds = array<i64: 128, 128>}, {pipeline_mode = #tpu.pipeline_mode<synchronous>, transform_indices = @transform_4, window_bounds = array<i64: 1, 128>}, {pipeline_mode = #tpu.pipeline_mode<synchronous>, transform_indices = @transform_5, window_bounds = array<i64: 128, 128>}, {pipeline_mode = #tpu.pipeline_mode<synchronous>, transform_indices = @transform_6, window_bounds = array<i64: 1, 128>}, {transform_indices = @transform_7, window_bounds = array<i64: 32, 128>}]} {
    %c0 = arith.constant 0 : index
    %c0_0 = arith.constant 0 : index
    %0 = vector.load %arg1[%c0, %c0_0] : memref<32x128xbf16, #tpu.memory_space<vmem>>, vector<32x128xbf16>
    %c0_1 = arith.constant 0 : index
    %c0_2 = arith.constant 0 : index
    %1 = vector.load %arg2[%c0_1, %c0_2] : memref<128x128xbf16, #tpu.memory_space<vmem>>, vector<128x128xbf16>
    %cst = arith.constant dense<0.000000e+00> : vector<32x128xf32>
    %2 = tpu.matmul %0, %1, %cst {dimension_numbers = #tpu.dot_dimension_numbers<[1], [0], [0], [1], [0, 0, 1, 1], [], []>} : vector<32x128xbf16>, vector<128x128xbf16>, vector<32x128xf32> -> vector<32x128xf32>
    %c0_3 = arith.constant 0 : index
    %c0_4 = arith.constant 0 : index
    %3 = vector.load %arg3[%c0_3, %c0_4] : memref<1x128xf32, #tpu.memory_space<vmem>>, vector<1x128xf32>
    %4 = vector.broadcast %3 : vector<1x128xf32> to vector<32x128xf32>
    %5 = arith.addf %2, %4 : vector<32x128xf32>
    %cst_5 = arith.constant 2.000000e-01 : f32
    %6 = vector.broadcast %cst_5 : f32 to vector<32x128xf32>
    %7 = arith.mulf %6, %5 : vector<32x128xf32>
    %8 = arith.maximumf %5, %7 : vector<32x128xf32>
    %9 = arith.truncf %8 : vector<32x128xf32> to vector<32x128xbf16>
    %c0_6 = arith.constant 0 : index
    %c0_7 = arith.constant 0 : index
    %10 = vector.load %arg4[%c0_6, %c0_7] : memref<128x128xbf16, #tpu.memory_space<vmem>>, vector<128x128xbf16>
    %cst_8 = arith.constant dense<0.000000e+00> : vector<32x128xf32>
    %11 = tpu.matmul %9, %10, %cst_8 {dimension_numbers = #tpu.dot_dimension_numbers<[1], [0], [0], [1], [0, 0, 1, 1], [], []>} : vector<32x128xbf16>, vector<128x128xbf16>, vector<32x128xf32> -> vector<32x128xf32>
    %c0_9 = arith.constant 0 : index
    %c0_10 = arith.constant 0 : index
    %12 = vector.load %arg5[%c0_9, %c0_10] : memref<1x128xf32, #tpu.memory_space<vmem>>, vector<1x128xf32>
    %13 = vector.broadcast %12 : vector<1x128xf32> to vector<32x128xf32>
    %14 = arith.addf %11, %13 : vector<32x128xf32>
    %cst_11 = arith.constant 2.000000e-01 : f32
    %15 = vector.broadcast %cst_11 : f32 to vector<32x128xf32>
    %16 = arith.mulf %15, %14 : vector<32x128xf32>
    %17 = arith.maximumf %14, %16 : vector<32x128xf32>
    %18 = arith.truncf %17 : vector<32x128xf32> to vector<32x128xbf16>
    %c0_12 = arith.constant 0 : index
    %c0_13 = arith.constant 0 : index
    %19 = vector.load %arg6[%c0_12, %c0_13] : memref<128x128xbf16, #tpu.memory_space<vmem>>, vector<128x128xbf16>
    %cst_14 = arith.constant dense<0.000000e+00> : vector<32x128xf32>
    %20 = tpu.matmul %18, %19, %cst_14 {dimension_numbers = #tpu.dot_dimension_numbers<[1], [0], [0], [1], [0, 0, 1, 1], [], []>} : vector<32x128xbf16>, vector<128x128xbf16>, vector<32x128xf32> -> vector<32x128xf32>
    %c0_15 = arith.constant 0 : index
    %c0_16 = arith.constant 0 : index
    %21 = vector.load %arg7[%c0_15, %c0_16] : memref<1x128xf32, #tpu.memory_space<vmem>>, vector<1x128xf32>
    %22 = vector.broadcast %21 : vector<1x128xf32> to vector<32x128xf32>
    %23 = arith.addf %20, %22 : vector<32x128xf32>
    %24 = arith.negf %23 : vector<32x128xf32>
    %25 = math.exp %24 : vector<32x128xf32>
    %cst_17 = arith.constant 1.000000e+00 : f32
    %26 = vector.broadcast %cst_17 : f32 to vector<32x128xf32>
    %27 = arith.addf %26, %25 : vector<32x128xf32>
    %28 = arith.divf %26, %27 : vector<32x128xf32>
    %29 = arith.truncf %28 : vector<32x128xf32> to vector<32x128xbf16>
    %c0_18 = arith.constant 0 : index
    %c0_19 = arith.constant 0 : index
    %30 = vector.load %arg8[%c0_18, %c0_19] : memref<32x128xbf16, #tpu.memory_space<vmem>>, vector<32x128xbf16>
    tpu.vector_store %arg8[%c0_18, %c0_19], %29 {strides = array<i32>} : memref<32x128xbf16, #tpu.memory_space<vmem>>, vector<32x128xbf16>,
    return
  }
  func.func @transform_0(%arg0: i32) -> (i32, i32) {
    %c0_i32 = arith.constant 0 : i32
    %c0_i32_0 = arith.constant 0 : i32
    return %arg0, %c0_i32 : i32, i32
  }
  func.func @transform_1(%arg0: i32) -> (i32, i32) {
    %c0_i32 = arith.constant 0 : i32
    %c0_i32_0 = arith.constant 0 : i32
    %c0_i32_1 = arith.constant 0 : i32
    return %c0_i32, %c0_i32_0 : i32, i32
  }
  func.func @transform_2(%arg0: i32) -> (i32, i32) {
    %c0_i32 = arith.constant 0 : i32
    %c0_i32_0 = arith.constant 0 : i32
    %c0_i32_1 = arith.constant 0 : i32
    return %c0_i32, %c0_i32_0 : i32, i32
  }
  func.func @transform_3(%arg0: i32) -> (i32, i32) {
    %c0_i32 = arith.constant 0 : i32
    %c0_i32_0 = arith.constant 0 : i32
    %c0_i32_1 = arith.constant 0 : i32
    return %c0_i32, %c0_i32_0 : i32, i32
  }
  func.func @transform_4(%arg0: i32) -> (i32, i32) {
    %c0_i32 = arith.constant 0 : i32
    %c0_i32_0 = arith.constant 0 : i32
    %c0_i32_1 = arith.constant 0 : i32
    return %c0_i32, %c0_i32_0 : i32, i32
  }
  func.func @transform_5(%arg0: i32) -> (i32, i32) {
    %c0_i32 = arith.constant 0 : i32
    %c0_i32_0 = arith.constant 0 : i32
    %c0_i32_1 = arith.constant 0 : i32
    return %c0_i32, %c0_i32_0 : i32, i32
  }
  func.func @transform_6(%arg0: i32) -> (i32, i32) {
    %c0_i32 = arith.constant 0 : i32
    %c0_i32_0 = arith.constant 0 : i32
    %c0_i32_1 = arith.constant 0 : i32
    return %c0_i32, %c0_i32_0 : i32, i32
  }
  func.func @transform_7(%arg0: i32) -> (i32, i32) {
    %c0_i32 = arith.constant 0 : i32
    %c0_i32_0 = arith.constant 0 : i32
    return %arg0, %c0_i32 : i32, i32
  }
}

</mosaic_0001>

<bundles_post_ra>
// kernel: tpu_custom_call.1
= control target key start
LH: loop header
LB: loop body
LE: loop exit
PB: predicated region body
PF: predicated region fallthrough
CT: control target
= control target key end

     0   :  { %12 = vsyncpa [#allocation3], 0  ;;  %s996_s0 = inlined_call_operand.hbm [shape: bf16[32,128], index: 0, kind: input, shape index: {}]   ;;  %s997_s1 = inlined_call_operand.hbm [shape: bf16[128,128], index: 1, kind: input, shape index: {}]   ;;  %s998_s2 = inlined_call_operand.vmem [shape: f32[1,128], index: 2, kind: input, shape index: {}]   ;;  %s999_s3 = inlined_call_operand.hbm [shape: bf16[128,128], index: 3, kind: input, shape index: {}]   ;;  %s1000_s4 = inlined_call_operand.vmem [shape: f32[1,128], index: 4, kind: input, shape index: {}]   ;;  %s1001_s5 = inlined_call_operand.hbm [shape: bf16[128,128], index: 5, kind: input, shape index: {}]   ;;  %s1002_s6 = inlined_call_operand.vmem [shape: f32[1,128], index: 6, kind: input, shape index: {}]   ;;  %s1003_s7 = inlined_call_operand.hbm [shape: bf16[32,128], index: 7, kind: output, shape index: {}]  }
   0x1   :  { %13 = vsyncpa [#allocation6], 0 }
   0x2   :  { %14 = vsyncpa [#allocation9], 0 }
   0x3   :  { %15 = vsyncpa [#allocation4], 0  ;;  %s851_s24 = smov [#allocation5]   ;;  %s852_s26 = smov [#allocation2]  }
   0x4   :  { %s33_s25 = sshll.u32 %s851_s24, 4  ;;  %s21_s27 = sshll.u32 %s852_s26, 4  ;;  %s34_s25 = int_to_ptr.vmem [resolvable:$true] %s33_s25  ;;  %s898_s27 = int_to_ptr.vmem [resolvable:$true] %s21_s27 }
   0x5   :  { %s733_s30 = scalar_lea.hbm %s997_s1, 1024 }
   0x6   :  { %p734_p0 = scmp.ne.s32.totalorder %s997_s1, %s733_s30  ;;  %p737_p1 = scmp.lt.u32.totalorder %s733_s30, %s997_s1 }
   0x8   :  { %p739_p2 = pnand %p737_p1, %p734_p0 }
   0xa   :  { %742 = shalt.err (!%p739_p2)
}
   0xb   :  { %s743_s12 = scalar_lea.vmem %s34_s25, 1024  ;;  %p748_p4 = scmp.lt.s32.totalorder %s34_s25, %s34_s25 }
   0xc   :  { %p744_p3 = scmp.ne.s32.totalorder %s34_s25, %s743_s12  ;;  %p749_p5 = scmp.lt.s32.totalorder %s743_s12, %s743_s12 }
   0xe   :  { %p750_p6 = por %p749_p5, %p748_p4 }
  0x10   :  { %p751_p7 = pnand %p750_p6, %p744_p3 }
  0x12   :  { %754 = shalt.err (!%p751_p7)
}
  0x13   :  { %s853_s13 = smov 64   ;;  %s854_s14 = smov 4  }
  0x14   :  { %39 = dma.hbm_to_vmem [thread:$0]  %s997_s1, 1024, %s34_s25, [#allocation6], %s853_s13, %s853_s13, %s854_s14  }
  0x15   :  { %s755_s19 = scalar_lea.hbm %s996_s0, 256 }
  0x16   :  { %p756_p8 = scmp.ne.s32.totalorder %s996_s0, %s755_s19  ;;  %p759_p9 = scmp.lt.u32.totalorder %s755_s19, %s996_s0 }
  0x18   :  { %p761_p10 = pnand %p759_p9, %p756_p8 }
  0x1a   :  { %764 = shalt.err (!%p761_p10)
}
  0x1b   :  { %s765_s24 = scalar_lea.vmem %s898_s27, 256  ;;  %p770_p12 = scmp.lt.s32.totalorder %s898_s27, %s898_s27 }
  0x1c   :  { %p766_p11 = scmp.ne.s32.totalorder %s898_s27, %s765_s24  ;;  %p771_p13 = scmp.lt.s32.totalorder %s765_s24, %s765_s24 }
  0x1e   :  { %p772_p0 = por %p771_p13, %p770_p12 }
  0x20   :  { %p773_p1 = pnand %p772_p0, %p766_p11 }
  0x22   :  { %776 = shalt.err (!%p773_p1)
}
  0x23   :  { %27 = dma.hbm_to_vmem [thread:$0]  %s996_s0, 256, %s898_s27, [#allocation3], %s853_s13, %s853_s13, %s854_s14  }
  0x24   :  { %s855_s26 = smov [#allocation7]   ;;  %s856_s29 = smov [#allocation8]  }
  0x25   :  { %s47_s28 = sshll.u32 %s855_s26, 4  ;;  %s61_s30 = sshll.u32 %s856_s29, 4  ;;  %s48_s28 = int_to_ptr.vmem [resolvable:$true] %s47_s28  ;;  %s935_s30 = int_to_ptr.vmem [resolvable:$true] %s61_s30 }
  0x26   :  { %s777_s10 = scalar_lea.hbm %s999_s3, 1024 }
  0x27   :  { %p778_p2 = scmp.ne.s32.totalorder %s999_s3, %s777_s10  ;;  %p781_p3 = scmp.lt.u32.totalorder %s777_s10, %s999_s3 }
  0x29   :  { %p783_p4 = pnand %p781_p3, %p778_p2 }
  0x2b   :  { %786 = shalt.err (!%p783_p4)
}
  0x2c   :  { %s787_s0 = scalar_lea.vmem %s48_s28, 1024  ;;  %p792_p6 = scmp.lt.s32.totalorder %s48_s28, %s48_s28 }
  0x2d   :  { %p788_p5 = scmp.ne.s32.totalorder %s48_s28, %s787_s0  ;;  %p793_p7 = scmp.lt.s32.totalorder %s787_s0, %s787_s0 }
  0x2f   :  { %p794_p8 = por %p793_p7, %p792_p6 }
  0x31   :  { %p795_p9 = pnand %p794_p8, %p788_p5 }
  0x33   :  { %798 = shalt.err (!%p795_p9)
}
  0x34   :  { %53 = dma.hbm_to_vmem [thread:$0]  %s999_s3, 1024, %s48_s28, [#allocation6], %s853_s13, %s853_s13, %s854_s14  }
  0x35   :  { %s799_s20 = scalar_lea.hbm %s1001_s5, 1024 }
  0x36   :  { %p800_p10 = scmp.ne.s32.totalorder %s1001_s5, %s799_s20  ;;  %p803_p11 = scmp.lt.u32.totalorder %s799_s20, %s1001_s5 }
  0x38   :  { %p805_p12 = pnand %p803_p11, %p800_p10 }
  0x3a   :  { %808 = shalt.err (!%p805_p12)
}
  0x3b   :  { %s809_s1 = scalar_lea.vmem %s935_s30, 1024  ;;  %p814_p0 = scmp.lt.s32.totalorder %s935_s30, %s935_s30 }
  0x3c   :  { %p810_p13 = scmp.ne.s32.totalorder %s935_s30, %s809_s1  ;;  %p815_p1 = scmp.lt.s32.totalorder %s809_s1, %s809_s1 }
  0x3e   :  { %p816_p2 = por %p815_p1, %p814_p0 }
  0x40   :  { %p817_p3 = pnand %p816_p2, %p810_p13 }
  0x42   :  { %820 = shalt.err (!%p817_p3)
}
  0x43   :  { %67 = dma.hbm_to_vmem [thread:$0]  %s1001_s5, 1024, %s935_s30, [#allocation9], %s853_s13, %s853_s13, %s854_s14  }
  0x44   :  { %843 = dma.done.wait [#allocation3], 256  }
  0x45   :  { %844 = vsyncadd [#allocation3], 4294967040 }
  0x46   :  { %845 = dma.done.wait [#allocation6], 2048  }
  0x47   :  { %846 = vsyncadd [#allocation6], 4294965248 }
  0x48   :  { %847 = dma.done.wait [#allocation9], 1024  }
  0x49   :  { %848 = vsyncadd [#allocation9], 4294966272  ;;  %v691_v0 = vld [vmem:[#allocation5] sm:$0xff]   ;;  %v692_v1 = vld [vmem:[#allocation5 + $0x8] sm:$0xff]  }
  0x4a   :  { %624 = vmatprep.subr.bf16.mxu0 %v691_v0  ;;  %v693_v2 = vld [vmem:[#allocation5 + $0x10] sm:$0xff]   ;;  %v694_v3 = vld [vmem:[#allocation5 + $0x18] sm:$0xff]   ;;  %v701_v5 = vld [vmem:[#allocation7] sm:$0xff]  }
  0x4b   :  { %625 = vmatpush3.bf16.msra.mxu0 %v691_v0  ;;  %v699_v4 = vld [vmem:[#allocation2] sm:$0xff]   ;;  %v702_v6 = vld [vmem:[#allocation7 + $0x8] sm:$0xff]   ;;  %v695_v7 = vld [vmem:[#allocation5 + $0x20] sm:$0xff]   ;;  %644 = vmatprep.subr.bf16.mxu1 %v701_v5 }
  0x4c   :  { %626 = vmatprep.subr.bf16.mxu0 %v692_v1  ;;  %640 = vmatprep.mubr.bf16.mxu0 %v699_v4  ;;  %v696_v8 = vld [vmem:[#allocation5 + $0x28] sm:$0xff]   ;;  %v703_v9 = vld [vmem:[#allocation7 + $0x10] sm:$0xff]   ;;  %v704_v10 = vld [vmem:[#allocation7 + $0x18] sm:$0xff]  }
  0x4d   :  { %645 = vmatpush3.bf16.msra.mxu1 %v701_v5  ;;  %v697_v11 = vld [vmem:[#allocation5 + $0x30] sm:$0xff]   ;;  %v705_v12 = vld [vmem:[#allocation7 + $0x20] sm:$0xff]   ;;  %v698_v13 = vld [vmem:[#allocation5 + $0x38] sm:$0xff]  }
  0x4e   :  { %646 = vmatprep.subr.bf16.mxu1 %v702_v6  ;;  %v700_v14 = vld [vmem:[#allocation2 + $0x8] sm:$0xff]   ;;  %v706_v15 = vld [vmem:[#allocation7 + $0x28] sm:$0xff]   ;;  %v707_v16 = vld [vmem:[#allocation7 + $0x30] sm:$0xff]  }
  0x4f   :  { %627 = vmatpush3.bf16.msra.mxu0 %v692_v1  ;;  %v708_v17 = vld [vmem:[#allocation7 + $0x38] sm:$0xff]   ;;  %v709_v18 = vld [vmem:[#allocation8] sm:$0xff]   ;;  %v710_v19 = vld [vmem:[#allocation8 + $0x8] sm:$0xff]  }
  0x50   :  { %628 = vmatprep.subr.bf16.mxu0 %v693_v2  ;;  %v711_v20 = vld [vmem:[#allocation8 + $0x10] sm:$0xff]   ;;  %v712_v21 = vld [vmem:[#allocation8 + $0x18] sm:$0xff]   ;;  %v713_v22 = vld [vmem:[#allocation8 + $0x20] sm:$0xff]  }
  0x51   :  { %647 = vmatpush3.bf16.msra.mxu1 %v702_v6  ;;  %v542_v23 = vld [vmem:[%s998_s2] ss:$0 sm:$0xff]  ;;  %v714_v42 = vld [vmem:[#allocation8 + $0x28] sm:$0xff]   ;;  %v716_v44 = vld [vmem:[#allocation8 + $0x38] sm:$0xff]  }
  0x52   :  { %648 = vmatprep.subr.bf16.mxu1 %v703_v9  ;;  %v715_v43 = vld [vmem:[#allocation8 + $0x30] sm:$0xff]  }
  0x53   :  { %629 = vmatpush3.bf16.msra.mxu0 %v693_v2  ;;  %v553_v45 = vld [vmem:[%s1000_s4] ss:$0 sm:$0xff] }
  0x54   :  { %630 = vmatprep.subr.bf16.mxu0 %v694_v3  ;;  %v562_v0 = vld [vmem:[%s1002_s6] ss:$0 sm:$0xff]  ;;  %s857_s6 = smov [#allocation10]  }
  0x55   :  { %649 = vmatpush3.bf16.msra.mxu1 %v703_v9  ;;  %s528_s30 = sshll.u32 %s857_s6, 4  ;;  %s529_s30 = int_to_ptr.vmem [resolvable:$true] %s528_s30 }
  0x56   :  { %650 = vmatprep.subr.bf16.mxu1 %v704_v10  ;;  %s821_s8 = scalar_lea.vmem %s529_s30, 256  ;;  %p826_p5 = scmp.lt.s32.totalorder %s529_s30, %s529_s30 }
  0x57   :  { %631 = vmatpush3.bf16.msra.mxu0 %v694_v3  ;;  %p822_p4 = scmp.ne.s32.totalorder %s529_s30, %s821_s8  ;;  %p827_p6 = scmp.lt.s32.totalorder %s821_s8, %s821_s8 }
  0x58   :  { %632 = vmatprep.subr.bf16.mxu0 %v695_v7 }
  0x59   :  { %651 = vmatpush3.bf16.msra.mxu1 %v704_v10  ;;  %p828_p7 = por %p827_p6, %p826_p5 }
  0x5a   :  { %652 = vmatprep.subr.bf16.mxu1 %v705_v12 }
  0x5b   :  { %633 = vmatpush3.bf16.msra.mxu0 %v695_v7  ;;  %p829_p8 = pnand %p828_p7, %p822_p4 }
  0x5c   :  { %634 = vmatprep.subr.bf16.mxu0 %v696_v8 }
  0x5d   :  { %653 = vmatpush3.bf16.msra.mxu1 %v705_v12 }
  0x5e   :  { %654 = vmatprep.subr.bf16.mxu1 %v706_v15 }
  0x5f   :  { %635 = vmatpush3.bf16.msra.mxu0 %v696_v8 }
  0x60   :  { %636 = vmatprep.subr.bf16.mxu0 %v697_v11 }
  0x61   :  { %655 = vmatpush3.bf16.msra.mxu1 %v706_v15 }
  0x62   :  { %656 = vmatprep.subr.bf16.mxu1 %v707_v16 }
  0x63   :  { %637 = vmatpush3.bf16.msra.mxu0 %v697_v11 }
  0x64   :  { %638 = vmatprep.subr.bf16.mxu0 %v698_v13 }
  0x65   :  { %657 = vmatpush3.bf16.msra.mxu1 %v707_v16 }
  0x66   :  { %658 = vmatprep.subr.bf16.mxu1 %v708_v17 }
  0x67   :  { %639 = vmatpush3.bf16.msra.mxu0 %v698_v13 }
  0x68   :  { %664 = vmatprep.subr.bf16.mxu0 %v709_v18 }
  0x69   :  { %659 = vmatpush3.bf16.msra.mxu1 %v708_v17 }
  0x6a   :  { %641 = vmatmul.mubr.bf16.vlgmr.msra.gmra.mrb[0].mxu0 %v700_v14 }
  0x6b   :  { %665 = vmatpush3.bf16.msra.mxu0 %v709_v18 }
  0x6c   :  { %666 = vmatprep.subr.bf16.mxu0 %v710_v19 }
  0x6f   :  { %667 = vmatpush3.bf16.msra.mxu0 %v710_v19 }
  0x70   :  { %668 = vmatprep.subr.bf16.mxu0 %v711_v20 }
  0x73   :  { %669 = vmatpush3.bf16.msra.mxu0 %v711_v20 }
  0x74   :  { %670 = vmatprep.subr.bf16.mxu0 %v712_v21 }
  0x77   :  { %671 = vmatpush3.bf16.msra.mxu0 %v712_v21 }
  0x78   :  { %672 = vmatprep.subr.bf16.mxu0 %v713_v22 }
  0x7b   :  { %673 = vmatpush3.bf16.msra.mxu0 %v713_v22 }
  0x7c   :  { %674 = vmatprep.subr.bf16.mxu0 %v714_v42 }
  0x7f   :  { %675 = vmatpush3.bf16.msra.mxu0 %v714_v42 }
  0x80   :  { %676 = vmatprep.subr.bf16.mxu0 %v715_v43 }
  0x83   :  { %677 = vmatpush3.bf16.msra.mxu0 %v715_v43 }
  0x84   :  { %678 = vmatprep.subr.bf16.mxu0 %v716_v44 }
  0x87   :  { %679 = vmatpush3.bf16.msra.mxu0 %v716_v44 }
 0x13d   :  { %v642_v24 = vpop.f32.mrb[0].mxu0 }
 0x13e   :  { %v213_v25 = vadd.f32 %v642_v24, %v542_v23  ;;  %v204_v26 = vpop.f32.mrb[1].mxu0 }
 0x13f   :  { %v205_v27 = vadd.f32 %v542_v23, %v204_v26  ;;  %v643_v28 = vpop.f32.mrb[2].mxu0 }
 0x140   :  { %v221_v29 = vmul.f32 0.2, %v213_v25  ;;  %v216_v30 = vadd.f32 %v643_v28, %v542_v23  ;;  %v207_v31 = vpop.f32.mrb[3].mxu0 }
 0x141   :  { %v219_v32 = vmul.f32 0.2, %v205_v27  ;;  %v208_v33 = vadd.f32 %v542_v23, %v207_v31 }
 0x142   :  { %v222_v34 = vmul.f32 0.2, %v216_v30  ;;  %v225_v36 = vmax.f32 %v213_v25, %v221_v29 }
 0x143   :  { %v220_v35 = vmul.f32 0.2, %v208_v33  ;;  %v223_v38 = vmax.f32 %v205_v27, %v219_v32 }
 0x144   :  { %v226_v37 = vmax.f32 %v216_v30, %v222_v34 }
 0x145   :  { %v224_v39 = vmax.f32 %v208_v33, %v220_v35 }
 0x146   :  { %v228_v40 = vpack.c.bf16 %v226_v37, %v225_v36 }
 0x147   :  { %v227_v41 = vpack.c.bf16 %v224_v39, %v223_v38 }
 0x149   :  { %660 = vmatprep.mubr.bf16.mxu1 %v227_v41 }
 0x14a   :  { %661 = vmatmul.mubr.bf16.vlgmr.msra.gmra.mrb[0].mxu1 %v228_v40 }
 0x21d   :  { %v662_v46 = vpop.f32.mrb[0].mxu1 }
 0x21e   :  { %v343_v47 = vadd.f32 %v662_v46, %v553_v45  ;;  %v334_v48 = vpop.f32.mrb[1].mxu1 }
 0x21f   :  { %v335_v49 = vadd.f32 %v553_v45, %v334_v48  ;;  %v663_v50 = vpop.f32.mrb[2].mxu1 }
 0x220   :  { %v351_v51 = vmul.f32 0.2, %v343_v47  ;;  %v346_v52 = vadd.f32 %v663_v50, %v553_v45  ;;  %v337_v53 = vpop.f32.mrb[3].mxu1 }
 0x221   :  { %v349_v54 = vmul.f32 0.2, %v335_v49  ;;  %v338_v55 = vadd.f32 %v553_v45, %v337_v53 }
 0x222   :  { %v352_v56 = vmul.f32 0.2, %v346_v52  ;;  %v355_v58 = vmax.f32 %v343_v47, %v351_v51 }
 0x223   :  { %v350_v57 = vmul.f32 0.2, %v338_v55  ;;  %v353_v60 = vmax.f32 %v335_v49, %v349_v54 }
 0x224   :  { %v356_v59 = vmax.f32 %v346_v52, %v352_v56 }
 0x225   :  { %v354_v61 = vmax.f32 %v338_v55, %v350_v57 }
 0x226   :  { %v358_v62 = vpack.c.bf16 %v356_v59, %v355_v58 }
 0x227   :  { %v357_v63 = vpack.c.bf16 %v354_v61, %v353_v60 }
 0x229   :  { %680 = vmatprep.mubr.bf16.mxu0 %v357_v63 }
 0x22a   :  { %681 = vmatmul.mubr.bf16.vlgmr.msra.gmra.mrb[4].mxu0 %v358_v62 }
 0x2fd   :  { %v682_v1 = vpop.f32.mrb[4].mxu0 }
 0x2fe   :  { %v473_v2 = vadd.f32 %v682_v1, %v562_v0  ;;  %v464_v3 = vpop.f32.mrb[5].mxu0 }
 0x2ff   :  { %v465_v4 = vadd.f32 %v562_v0, %v464_v3  ;;  %v683_v5 = vpop.f32.mrb[6].mxu0 }
 0x300   :  { %v573_v6 = vmul.f32 -1.442695, %v473_v2  ;;  %v476_v7 = vadd.f32 %v683_v5, %v562_v0  ;;  %v467_v8 = vpop.f32.mrb[7].mxu0 }
 0x301   :  { %v571_v9 = vmul.f32 -1.442695, %v465_v4  ;;  %v468_v10 = vadd.f32 %v562_v0, %v467_v8 }
 0x302   :  { %717 = vpow2.f32 %v573_v6  ;;  %v574_v11 = vmul.f32 -1.442695, %v476_v7 }
 0x303   :  { %719 = vpow2.f32 %v571_v9  ;;  %v572_v12 = vmul.f32 -1.442695, %v468_v10 }
 0x304   :  { %721 = vpow2.f32 %v574_v11 }
 0x305   :  { %723 = vpow2.f32 %v572_v12 }
 0x30c   :  { %v718_v13 = vpop.eup %717 }
 0x30d   :  { %v720_v14 = vpop.eup %719  ;;  %v493_v15 = vadd.f32 1.0, %v718_v13 }
 0x30e   :  { %v722_v16 = vpop.eup %721  ;;  %v491_v17 = vadd.f32 1.0, %v720_v14 }
 0x30f   :  { %v724_v18 = vpop.eup %723  ;;  %725 = vrcp.f32 %v493_v15  ;;  %v494_v19 = vadd.f32 1.0, %v722_v16 }
 0x310   :  { %727 = vrcp.f32 %v491_v17  ;;  %v492_v20 = vadd.f32 1.0, %v724_v18 }
 0x311   :  { %729 = vrcp.f32 %v494_v19 }
 0x312   :  { %731 = vrcp.f32 %v492_v20 }
 0x319   :  { %v726_v21 = vpop.eup %725 }
 0x31a   :  { %v728_v22 = vpop.eup %727 }
 0x31b   :  { %v730_v23 = vpop.eup %729 }
 0x31c   :  { %v732_v24 = vpop.eup %731  ;;  %v591_v25 = vpack.c.bf16 %v730_v23, %v726_v21 }
 0x31d   :  { %v586_v26 = vpack.c.bf16 %v732_v24, %v728_v22 }
 0x31e   :  { %593 = vst [vmem:[#allocation10 + $0x8] sm:$0xff] %v591_v25  }
 0x31f   :  { %587 = vst [vmem:[#allocation10] sm:$0xff] %v586_v26  }
 0x320   :  { %832 = shalt.err (!%p829_p8)
}
 0x321   :  { %s833_s11 = scalar_lea.hbm %s1003_s7, 256 }
 0x322   :  { %p834_p9 = scmp.ne.s32.totalorder %s1003_s7, %s833_s11  ;;  %p837_p10 = scmp.lt.u32.totalorder %s833_s11, %s1003_s7 }
 0x324   :  { %p839_p11 = pnand %p837_p10, %p834_p9 }
 0x326   :  { %842 = shalt.err (!%p839_p11)
}
 0x327   :  { %534 = dma.vmem_to_hbm [thread:$0]  %s529_s30, 256, %s1003_s7, [#allocation4], %s853_s13, %s853_s13, %s854_s14  }
 0x328   :  { %849 = dma.done.wait [#allocation4], 256  }
 0x329   :  { %850 = vsyncadd [#allocation4], 4294967040 }
 0x32a   :  { %538 = vsyncpa [#allocation3], 1 }
 0x32b   :  { %539 = vsyncpa [#allocation6], 1 }
 0x32c   :  { %540 = vsyncpa [#allocation9], 1 }
 0x32d   :  { %541 = vsyncpa [#allocation4], 1 }

</bundles_post_ra>
